<compile_context>
chip_gen: v6e
topology: v6e:2x2x1
jax: 0.10.0
libtpu: 0.0.40
codegen_flags: <defaults>
</compile_context>

<pallas_src>
import jax
import jax.numpy as jnp
from jax.experimental import pallas as pl
from jax.experimental.pallas import tpu as pltpu


# ------------------------------ kernel ------------------------------------ #

def _film_kernel(x_ref, g_ref, b_ref, o_ref):
    """Elementwise FiLM on one (row_block, lane_block) latent tile.

    x_ref : (row_block, lane_block) latent tile
    g_ref : (row_block, 1) per-row gamma (broadcast over lanes on the VPU)
    b_ref : (row_block, 1) per-row beta
    o_ref : (row_block, lane_block)
    """
    o_ref[...] = (x_ref[...] * g_ref[...] + b_ref[...]).astype(o_ref.dtype)


# --------------------------- tiling heuristics ----------------------------- #

# ~6 MiB per single latent buffer:  in + out, double-buffered -> ~24 MiB of
# latent VMEM.  Big enough to amortize per-step overhead (>85% of HBM roofline
# on v6e, still well-amortized on v7x's 3.2 TB/s), small enough to fit v7x's
# 64 MiB physical VMEM with headroom; v5e/v6e have 128 MiB physical and we set
# vmem_limit_bytes explicitly, so the 16/32 MiB scoped defaults don't bind.
_PER_BUFFER_BUDGET = 6 << 20


def _choose_tiles(R, S, itemsize, budget_bytes=_PER_BUFFER_BUDGET):
    """Pick (row_block, lane_block) for the (R, S) latent matrix.

    Preference order (all correctness-preserving):
      1. whole array in one block;
      2. full-S rows (fully contiguous DMA), row_block = multiple-of-8
         divisor of R under the budget;
      3. row_block = 8, lane_block = multiple-of-128 divisor of S;
      4. fall back to capped sizes (remainder tiles handled by Pallas masking).
    """
    if R * S * itemsize <= budget_bytes:
        return R, S

    rb_min = min(8, R)
    if rb_min * S * itemsize <= budget_bytes:
        best = rb_min
        r = 8
        while r <= R:
            if R % r == 0 and r * S * itemsize <= budget_bytes:
                best = r
            r += 8
        return best, S

    max_lanes = max(128, (budget_bytes // (rb_min * itemsize)) // 128 * 128)
    best = None
    l = 128
    while l <= min(S, max_lanes):
        if S % l == 0:
            best = l
        l += 128
    if best is None:
        best = min(max_lanes, S)   # masked remainder tile (still correct)
    return rb_min, best


# ------------------------------ wrapper ------------------------------------ #

def film_latent(latent, condition, params, *, donate_latent=False):
    """FiLM_Latent forward.

    latent:    (ZN, C, D, H, W)
    condition: (ZN, d_condition)
    params:    dict with w1 (d_condition, d_model), b1 (1, d_model),
               w2 (d_model, 2*d_model), b2 (1, 2*d_model)
    """
    ZN, C, D, H, W = latent.shape
    S = D * H * W
    R = ZN * C

    w1, b1, w2, b2 = params["w1"], params["b1"], params["w2"], params["b2"]
    d_condition, d_model = w1.shape
    assert C == d_model, "FiLM requires latent channels == d_model"
    assert w2.shape == (d_model, 2 * d_model)

    # --- conditioning MLP: hoisted to plain XLA (microscopic vs. latent IO) ---
    # MLP(d_in=d_condition, d_out=2*d_model, d_hidden=d_model, hidden_layers=1,
    #     act='silu', dropout=0.0)  ->  Linear -> SiLU -> Linear.
    h = condition.astype(jnp.float32) @ w1 + b1          # (ZN, d_model)
    h = h * jax.nn.sigmoid(h)                             # SiLU
    gb = h @ w2 + b2                                       # (ZN, 2*d_model)
    gamma_rows = gb[:, :C].reshape(R, 1)                   # row = zn*C + c
    beta_rows = gb[:, C:].reshape(R, 1)

    # --- FiLM elementwise pass: 2-D row layout, pure HBM streaming ----------
    x2 = latent.reshape(R, S)
    itemsize = jnp.dtype(latent.dtype).itemsize
    row_block, lane_block = _choose_tiles(R, S, itemsize)
    grid = (pl.cdiv(R, row_block), pl.cdiv(S, lane_block))

    tile_bytes = row_block * lane_block * itemsize
    gb_tile_bytes = 2 * 2 * row_block * 4                 # gamma+beta, dbl-buf
    vmem_limit = int(4 * tile_bytes + gb_tile_bytes + (2 << 20))
    vmem_limit = min(max(vmem_limit, 16 << 20), 48 << 20)

    out2 = pl.pallas_call(
        _film_kernel,
        out_shape=jax.ShapeDtypeStruct((R, S), latent.dtype),
        grid=grid,
        in_specs=[
            pl.BlockSpec((row_block, lane_block), lambda i, j: (i, j)),
            pl.BlockSpec((row_block, 1), lambda i, j: (i, 0)),
            pl.BlockSpec((row_block, 1), lambda i, j: (i, 0)),
        ],
        out_specs=pl.BlockSpec((row_block, lane_block), lambda i, j: (i, j)),
        input_output_aliases=({0: 0} if donate_latent else {}),
        compiler_params=pltpu.CompilerParams(
            dimension_semantics=("parallel", "parallel"),
            vmem_limit_bytes=vmem_limit),
    )(x2, gamma_rows, beta_rows)

    return out2.reshape(ZN, C, D, H, W)


# ------------------------------ demo / check ------------------------------- #

def init_params(key, d_condition, d_model):
    k1, k2, k3, k4 = jax.random.split(key, 4)
    w1 = jax.random.normal(k1, (d_condition, d_model), jnp.float32) * 0.05
    b1 = jax.random.normal(k2, (1, d_model), jnp.float32) * 0.05
    w2 = jax.random.normal(k3, (d_model, 2 * d_model), jnp.float32) * 0.05
    b2 = jax.random.normal(k4, (1, 2 * d_model), jnp.float32) * 0.05
    return {"w1": w1, "b1": b1, "w2": w2, "b2": b2}


def _reference(latent, condition, params):
    h = condition @ params["w1"] + params["b1"]
    h = h * jax.nn.sigmoid(h)
    gb = h @ params["w2"] + params["b2"]
    ZN, C = latent.shape[0], latent.shape[1]
    gamma = gb[:, :C].reshape(ZN, C, 1, 1, 1)
    beta = gb[:, C:].reshape(ZN, C, 1, 1, 1)
    return gamma * latent + beta


if __name__ == "__main__":
    d_model = 32        # latent channel dim C
    d_condition = 32
    ZN, D, H, W = 2, 4, 8, 4

    key = jax.random.PRNGKey(0)
    k_lat, k_cond, k_par = jax.random.split(key, 3)
    latent = jax.random.normal(k_lat, (ZN, d_model, D, H, W), jnp.float32)
    condition = jax.random.normal(k_cond, (ZN, d_condition), jnp.float32)
    params = init_params(k_par, d_condition, d_model)

    film = jax.jit(lambda lat, cond: film_latent(lat, cond, params))
    out = jax.block_until_ready(film(latent, condition))

    ref = _reference(latent, condition, params)
    assert out.shape == (ZN, d_model, D, H, W)
    assert jnp.allclose(out, ref, atol=1e-4, rtol=1e-4), (
        float(jnp.max(jnp.abs(out - ref))))
    print("KERNEL_OK")
</pallas_src>

<mosaic_0001>
module attributes {stable_mosaic.version = 11 : i64} {
  func.func @_film_kernel(%arg0: i32, %arg1: i32, %arg2: memref<64x128xf32, #tpu.memory_space<vmem>>, %arg3: memref<64x1xf32, #tpu.memory_space<vmem>>, %arg4: memref<64x1xf32, #tpu.memory_space<vmem>>, %arg5: memref<64x128xf32, #tpu.memory_space<vmem>>) attributes {dimension_semantics = [#tpu.dimension_semantics<parallel>, #tpu.dimension_semantics<parallel>], iteration_bounds = array<i64: 1, 1>, scalar_prefetch = 0 : i64, scratch_operands = 0 : i64, tpu.core_type = #tpu.core_type<tc>, window_params = [{transform_indices = @transform_0, window_bounds = array<i64: 64, 128>}, {transform_indices = @transform_1, window_bounds = array<i64: 64, 1>}, {transform_indices = @transform_2, window_bounds = array<i64: 64, 1>}, {transform_indices = @transform_3, window_bounds = array<i64: 64, 128>}]} {
    %c0 = arith.constant 0 : index
    %c0_0 = arith.constant 0 : index
    %0 = vector.load %arg2[%c0, %c0_0] : memref<64x128xf32, #tpu.memory_space<vmem>>, vector<64x128xf32>
    %c0_1 = arith.constant 0 : index
    %c0_2 = arith.constant 0 : index
    %1 = vector.load %arg3[%c0_1, %c0_2] : memref<64x1xf32, #tpu.memory_space<vmem>>, vector<64x1xf32>
    %2 = vector.broadcast %1 : vector<64x1xf32> to vector<64x128xf32>
    %3 = arith.mulf %0, %2 : vector<64x128xf32>
    %c0_3 = arith.constant 0 : index
    %c0_4 = arith.constant 0 : index
    %4 = vector.load %arg4[%c0_3, %c0_4] : memref<64x1xf32, #tpu.memory_space<vmem>>, vector<64x1xf32>
    %5 = vector.broadcast %4 : vector<64x1xf32> to vector<64x128xf32>
    %6 = arith.addf %3, %5 : vector<64x128xf32>
    %c0_5 = arith.constant 0 : index
    %c0_6 = arith.constant 0 : index
    %7 = vector.load %arg5[%c0_5, %c0_6] : memref<64x128xf32, #tpu.memory_space<vmem>>, vector<64x128xf32>
    tpu.vector_store %arg5[%c0_5, %c0_6], %6 {strides = array<i32>} : memref<64x128xf32, #tpu.memory_space<vmem>>, vector<64x128xf32>,
    return
  }
  func.func @transform_0(%arg0: i32, %arg1: i32) -> (i32, i32) {
    %c0_i32 = arith.constant 0 : i32
    return %arg0, %arg1 : i32, i32
  }
  func.func @transform_1(%arg0: i32, %arg1: i32) -> (i32, i32) {
    %c0_i32 = arith.constant 0 : i32
    %c0_i32_0 = arith.constant 0 : i32
    return %arg0, %c0_i32 : i32, i32
  }
  func.func @transform_2(%arg0: i32, %arg1: i32) -> (i32, i32) {
    %c0_i32 = arith.constant 0 : i32
    %c0_i32_0 = arith.constant 0 : i32
    return %arg0, %c0_i32 : i32, i32
  }
  func.func @transform_3(%arg0: i32, %arg1: i32) -> (i32, i32) {
    %c0_i32 = arith.constant 0 : i32
    return %arg0, %arg1 : i32, i32
  }
}

</mosaic_0001>

<bundles_post_ra>
// kernel: _lambda_.1
= control target key start
LH: loop header
LB: loop body
LE: loop exit
PB: predicated region body
PF: predicated region fallthrough
CT: control target
= control target key end

     0   :  { %v149_v0 = vmov 0   ;;  %s266_s1 = inlined_call_operand.vmem [shape: f32[64,1], index: 1, kind: input, shape index: {}]   ;;  %s267_s2 = inlined_call_operand.vmem [shape: f32[64,1], index: 2, kind: input, shape index: {}]   ;;  %s268_s0 = inlined_call_operand.vmem [shape: f32[64,128], index: 0, kind: input, shape index: {}]   ;;  %s269_s3 = inlined_call_operand.vmem [shape: f32[64,128], index: 3, kind: output, shape index: {}]  }
   0x1   :  { %148 = vset.pattern.permute.xlu1 %v149_v0  ;;  %147 = vset.pattern.permute.xlu0 %v149_v0  ;;  %v24_v1 = vld [vmem:[%s266_s1 + $0x10] sm:$0xff]  ;;  %v22_v2 = vld [vmem:[%s266_s1] sm:$0xff]  ;;  %v25_v3 = vld [vmem:[%s266_s1 + $0x18] sm:$0xff] }
   0x2   :  { %42 = vperm.xlu1 %148, %v24_v1   ;;  %32 = vperm.xlu0 %147, %v22_v2   ;;  %v23_v4 = vld [vmem:[%s266_s1 + $0x8] sm:$0xff]  ;;  %v26_v6 = vld [vmem:[%s266_s1 + $0x20] sm:$0xff]  ;;  %v29_v7 = vld [vmem:[%s266_s1 + $0x38] sm:$0xff] }
   0x3   :  { %v27_v5 = vld [vmem:[%s266_s1 + $0x28] sm:$0xff]  ;;  %v28_v8 = vld [vmem:[%s266_s1 + $0x30] sm:$0xff]  ;;  %v78_v10 = vld [vmem:[%s267_s2] sm:$0xff] }
   0x4   :  { %v79_v9 = vld [vmem:[%s267_s2 + $0x8] sm:$0xff]  ;;  %v81_v11 = vld [vmem:[%s267_s2 + $0x18] sm:$0xff]  ;;  %v80_v12 = vld [vmem:[%s267_s2 + $0x10] sm:$0xff] }
   0x5   :  { %v83_v13 = vld [vmem:[%s267_s2 + $0x28] sm:$0xff]  ;;  %v82_v14 = vld [vmem:[%s267_s2 + $0x20] sm:$0xff]  ;;  %v85_v15 = vld [vmem:[%s267_s2 + $0x38] sm:$0xff] }
   0x6   :  { %47 = vperm.xlu1 %148, %v25_v3   ;;  %37 = vperm.xlu0 %147, %v23_v4   ;;  %v84_v16 = vld [vmem:[%s267_s2 + $0x30] sm:$0xff]  ;;  %v14_v23 = vld [vmem:[%s268_s0] sm:$0xff]  ;;  %v15_v24 = vld [vmem:[%s268_s0 + $0x8] sm:$0xff] }
   0x7   :  { %v16_v29 = vld [vmem:[%s268_s0 + $0x10] sm:$0xff]  ;;  %v17_v30 = vld [vmem:[%s268_s0 + $0x18] sm:$0xff]  ;;  %v19_v37 = vld [vmem:[%s268_s0 + $0x28] sm:$0xff] }
   0x8   :  { %v18_v38 = vld [vmem:[%s268_s0 + $0x20] sm:$0xff]  ;;  %v21_v45 = vld [vmem:[%s268_s0 + $0x38] sm:$0xff]  ;;  %v20_v46 = vld [vmem:[%s268_s0 + $0x30] sm:$0xff] }
   0xa   :  { %57 = vperm.xlu1 %148, %v27_v5   ;;  %52 = vperm.xlu0 %147, %v26_v6  }
   0xe   :  { %67 = vperm.xlu1 %148, %v29_v7   ;;  %62 = vperm.xlu0 %147, %v28_v8  }
  0x12   :  { %93 = vperm.xlu1 %148, %v79_v9   ;;  %88 = vperm.xlu0 %147, %v78_v10  }
  0x16   :  { %103 = vperm.xlu1 %148, %v81_v11   ;;  %98 = vperm.xlu0 %147, %v80_v12  }
  0x1a   :  { %113 = vperm.xlu1 %148, %v83_v13   ;;  %108 = vperm.xlu0 %147, %v82_v14  }
  0x1e   :  { %123 = vperm.xlu1 %148, %v85_v15   ;;  %118 = vperm.xlu0 %147, %v84_v16  }
  0x7d   :  { %v43_v17 = vpop.permute.xlu1 %42  ;;  %v33_v18 = vpop.permute.xlu0 %32 }
  0x7e   :  { %v70_v27 = vmul.f32 %v33_v18, %v14_v23  ;;  %v72_v35 = vmul.f32 %v43_v17, %v16_v29 }
  0x81   :  { %v48_v19 = vpop.permute.xlu1 %47  ;;  %v38_v20 = vpop.permute.xlu0 %37 }
  0x82   :  { %v71_v28 = vmul.f32 %v38_v20, %v15_v24  ;;  %v73_v36 = vmul.f32 %v48_v19, %v17_v30 }
  0x85   :  { %v58_v21 = vpop.permute.xlu1 %57  ;;  %v53_v22 = vpop.permute.xlu0 %52 }
  0x86   :  { %v75_v43 = vmul.f32 %v58_v21, %v19_v37  ;;  %v74_v44 = vmul.f32 %v53_v22, %v18_v38 }
  0x89   :  { %v68_v25 = vpop.permute.xlu1 %67  ;;  %v63_v26 = vpop.permute.xlu0 %62 }
  0x8a   :  { %v77_v51 = vmul.f32 %v68_v25, %v21_v45  ;;  %v76_v52 = vmul.f32 %v63_v26, %v20_v46 }
  0x8d   :  { %v94_v31 = vpop.permute.xlu1 %93  ;;  %v89_v32 = vpop.permute.xlu0 %88 }
  0x8e   :  { %v127_v33 = vadd.f32 %v94_v31, %v71_v28  ;;  %v126_v34 = vadd.f32 %v89_v32, %v70_v27 }
  0x90   :  { %135 = vst [vmem:[%s269_s3 + $0x8] sm:$0xff] %v127_v33  ;;  %134 = vst [vmem:[%s269_s3] sm:$0xff] %v126_v34 }
  0x91   :  { %v104_v39 = vpop.permute.xlu1 %103  ;;  %v99_v40 = vpop.permute.xlu0 %98 }
  0x92   :  { %v129_v41 = vadd.f32 %v104_v39, %v73_v36  ;;  %v128_v42 = vadd.f32 %v99_v40, %v72_v35 }
  0x94   :  { %137 = vst [vmem:[%s269_s3 + $0x18] sm:$0xff] %v129_v41  ;;  %136 = vst [vmem:[%s269_s3 + $0x10] sm:$0xff] %v128_v42 }
  0x95   :  { %v114_v47 = vpop.permute.xlu1 %113  ;;  %v109_v48 = vpop.permute.xlu0 %108 }
  0x96   :  { %v131_v49 = vadd.f32 %v114_v47, %v75_v43  ;;  %v130_v50 = vadd.f32 %v109_v48, %v74_v44 }
  0x98   :  { %139 = vst [vmem:[%s269_s3 + $0x28] sm:$0xff] %v131_v49  ;;  %138 = vst [vmem:[%s269_s3 + $0x20] sm:$0xff] %v130_v50 }
  0x99   :  { %v124_v53 = vpop.permute.xlu1 %123  ;;  %v119_v54 = vpop.permute.xlu0 %118 }
  0x9a   :  { %v133_v55 = vadd.f32 %v124_v53, %v77_v51  ;;  %v132_v56 = vadd.f32 %v119_v54, %v76_v52 }
  0x9c   :  { %141 = vst [vmem:[%s269_s3 + $0x38] sm:$0xff] %v133_v55  ;;  %140 = vst [vmem:[%s269_s3 + $0x30] sm:$0xff] %v132_v56 }

</bundles_post_ra>
